<compile_context>
chip_gen: v7x
topology: tpu7x:2x2x1
jax: 0.10.0
libtpu: 0.0.40
codegen_flags: <defaults>
</compile_context>

<pallas_src>
import jax
import jax.numpy as jnp
from jax.experimental import pallas as pl
from jax.experimental.pallas import tpu as pltpu

_EPS = 1e-12      # PyTorch F.normalize default eps
_LANES = 128
_TARGET_BUF_BYTES = 2 * 1024 * 1024   # ~2 MiB per pipeline buffer


# --------------------------------------------------------------------------
# Kernels
# --------------------------------------------------------------------------
def _l2norm_channel_kernel(x_ref, o_ref):
    # Block (batch dim squeezed): (C, S, 128). Reduce over major channel axis 0.
    x = x_ref[...].astype(jnp.float32)
    sumsq = jnp.sum(x * x, axis=0, keepdims=True)            # (1, S, 128)
    inv = jax.lax.rsqrt(jnp.maximum(sumsq, _EPS * _EPS))      # == 1 / max(||x||, eps)
    o_ref[...] = (x * inv).astype(o_ref.dtype)


def _l2norm_lastdim_kernel(x_ref, o_ref):
    # Block: (TN, C). Reduce over the lane axis (XLU cross-lane reduce).
    x = x_ref[...].astype(jnp.float32)
    sumsq = jnp.sum(x * x, axis=-1, keepdims=True)            # (TN, 1)
    inv = jax.lax.rsqrt(jnp.maximum(sumsq, _EPS * _EPS))
    o_ref[...] = (x * inv).astype(o_ref.dtype)


# --------------------------------------------------------------------------
# Wrappers
# --------------------------------------------------------------------------
def _tile_rows(c, rows, itemsize):
    """Rows of 128 lanes per block: target ~2 MiB per buffer (~8 MiB live)."""
    per_row_bytes = max(c, 1) * _LANES * max(int(itemsize), 4)  # f32 upcast in-kernel
    s = max(8, _TARGET_BUF_BYTES // per_row_bytes)
    s = max(8, (s // 8) * 8)            # sublane-aligned tile rows
    return rows if rows <= s else s


def _l2norm_lastdim(x2):
    """Normalize each row of a 2D array (N, C) along its last (contiguous) dim."""
    n, c = x2.shape
    per_row_bytes = max(c, 1) * max(int(jnp.dtype(x2.dtype).itemsize), 4)
    tn = max(8, _TARGET_BUF_BYTES // per_row_bytes)
    tn = max(8, (tn // 8) * 8)
    if n <= tn:
        tn, n_p = n, n                  # block dim == full dim -> always legal
    else:
        n_p = pl.cdiv(n, tn) * tn
    x_p = x2 if n_p == n else jnp.pad(x2, ((0, n_p - n), (0, 0)))

    out = pl.pallas_call(
        _l2norm_lastdim_kernel,
        out_shape=jax.ShapeDtypeStruct((n_p, c), x2.dtype),
        grid_spec=pltpu.PrefetchScalarGridSpec(
            num_scalar_prefetch=0,
            grid=(n_p // tn,),
            in_specs=[pl.BlockSpec((tn, c), lambda i: (i, 0))],
            out_specs=pl.BlockSpec((tn, c), lambda i: (i, 0)),
        ),
        compiler_params=pltpu.CompilerParams(
            dimension_semantics=("parallel",),
        ),
    )(x_p)
    return out if n_p == n else out[:n]


def l2norm(x, dim=1):
    """L2-normalize `x` along `dim` (default 1 = channel), like F.normalize(p=2)."""
    if dim != 1 and not (x.ndim == 2 and dim in (-1, 1)):
        return jnp.moveaxis(l2norm(jnp.moveaxis(x, dim, 1), dim=1), 1, dim)

    # 2D descriptors: normalize the contiguous last dim directly.
    if x.ndim == 2:
        return _l2norm_lastdim(x)

    orig_shape = x.shape
    n, c = orig_shape[0], orig_shape[1]
    hw = 1
    for s in orig_shape[2:]:
        hw *= s

    # (N, C, 1, 1) after global pooling -> same as 2D descriptor path.
    if hw == 1:
        return _l2norm_lastdim(x.reshape(n, c)).reshape(orig_shape)

    x3 = x.reshape(n, c, hw)

    # Choose spatial tile (S rows of 128 lanes) and pad HW (only when needed)
    # to a multiple of S*128 so the grid divides evenly and all loads/stores
    # stay lane-dense.
    rows = pl.cdiv(hw, _LANES)
    S = _tile_rows(c, rows, jnp.dtype(x.dtype).itemsize)
    rows_p = pl.cdiv(rows, S) * S
    hw_p = rows_p * _LANES
    if hw_p != hw:
        x3 = jnp.pad(x3, ((0, 0), (0, 0), (0, hw_p - hw)))
    x4 = x3.reshape(n, c, rows_p, _LANES)

    block = (None, c, S, _LANES)              # batch squeezed; full C in-block
    index_map = lambda b, t: (b, 0, t, 0)

    out4 = pl.pallas_call(
        _l2norm_channel_kernel,
        out_shape=jax.ShapeDtypeStruct((n, c, rows_p, _LANES), x.dtype),
        grid_spec=pltpu.PrefetchScalarGridSpec(
            num_scalar_prefetch=0,
            grid=(n, rows_p // S),
            in_specs=[pl.BlockSpec(block, index_map)],
            out_specs=pl.BlockSpec(block, index_map),
        ),
        compiler_params=pltpu.CompilerParams(
            dimension_semantics=("parallel", "parallel"),
        ),
    )(x4)

    out3 = out4.reshape(n, c, hw_p)
    if hw_p != hw:
        out3 = out3[:, :, :hw]
    return out3.reshape(orig_shape)


# --------------------------------------------------------------------------
# Self-test
# --------------------------------------------------------------------------
if __name__ == "__main__":
    def _ref(x, dim=1):
        norm = jnp.sqrt(jnp.sum(x * x, axis=dim, keepdims=True))
        return x / jnp.maximum(norm, _EPS)

    key = jax.random.PRNGKey(0)

    # Main spec-like input: (B=2, C=4, H=16, W=16), dim=1.
    x = jax.random.normal(key, (2, 4, 16, 16), dtype=jnp.float32)
    y = l2norm(x)
    jax.block_until_ready(y)
    assert jnp.allclose(y, _ref(x), atol=1e-6, rtol=1e-5), "4D mismatch vs reference"
    assert jnp.allclose(jnp.sum(y * y, axis=1), 1.0, atol=1e-5), "4D not unit norm"

    # Non-128-aligned spatial path (wrapper-side zero padding).
    x2 = jax.random.normal(jax.random.PRNGKey(0), (2, 4, 7, 7), dtype=jnp.float32)
    y2 = l2norm(x2)
    jax.block_until_ready(y2)
    assert jnp.allclose(y2, _ref(x2), atol=1e-6, rtol=1e-5), "ragged 4D mismatch"

    # 2D descriptor path (common PlaceRec use: normalize pooled descriptors).
    x3 = jax.random.normal(jax.random.PRNGKey(0), (16, 512), dtype=jnp.float32)
    y3 = l2norm(x3)
    jax.block_until_ready(y3)
    assert jnp.allclose(y3, _ref(x3), atol=1e-6, rtol=1e-5), "2D mismatch"

    # (N, C, 1, 1) after global pooling -> routed through the lane-reduce path.
    x4 = jax.random.normal(jax.random.PRNGKey(0), (4, 256, 1, 1), dtype=jnp.float32)
    y4 = l2norm(x4)
    jax.block_until_ready(y4)
    assert jnp.allclose(y4, _ref(x4), atol=1e-6, rtol=1e-5), "(N,C,1,1) mismatch"

    print("KERNEL_OK")
</pallas_src>

<mosaic_0001>
module attributes {stable_mosaic.version = 11 : i64} {
  func.func @_l2norm_channel_kernel(%arg0: i32, %arg1: i32, %arg2: memref<1x4x2x128xf32, #tpu.memory_space<vmem>>, %arg3: memref<1x4x2x128xf32, #tpu.memory_space<vmem>>) attributes {dimension_semantics = [#tpu.dimension_semantics<parallel>, #tpu.dimension_semantics<parallel>], iteration_bounds = array<i64: 2, 1>, scalar_prefetch = 0 : i64, scratch_operands = 0 : i64, tpu.core_type = #tpu.core_type<tc>, window_params = [{transform_indices = @transform_0, window_bounds = array<i64: 1, 4, 2, 128>}, {transform_indices = @transform_1, window_bounds = array<i64: 1, 4, 2, 128>}]} {
    %c0 = arith.constant 0 : index
    %c0_0 = arith.constant 0 : index
    %c0_1 = arith.constant 0 : index
    %c0_2 = arith.constant 0 : index
    %0 = vector.load %arg2[%c0, %c0_0, %c0_1, %c0_2] : memref<1x4x2x128xf32, #tpu.memory_space<vmem>>, vector<1x4x2x128xf32>
    %1 = vector.shape_cast %0 : vector<1x4x2x128xf32> to vector<4x2x128xf32>
    %2 = arith.mulf %1, %1 : vector<4x2x128xf32>
    %cst = arith.constant dense<0.000000e+00> : vector<2x128xf32>
    %3 = vector.multi_reduction <add>, %2, %cst [0] : vector<4x2x128xf32> to vector<2x128xf32>
    %4 = vector.shape_cast %3 : vector<2x128xf32> to vector<1x2x128xf32>
    %cst_3 = arith.constant 1.000000e-24 : f32
    %5 = vector.broadcast %cst_3 : f32 to vector<1x2x128xf32>
    %6 = arith.maximumf %4, %5 : vector<1x2x128xf32>
    %7 = math.rsqrt %6 : vector<1x2x128xf32>
    %8 = vector.broadcast %7 : vector<1x2x128xf32> to vector<4x2x128xf32>
    %9 = arith.mulf %1, %8 : vector<4x2x128xf32>
    %c0_4 = arith.constant 0 : index
    %c0_5 = arith.constant 0 : index
    %c0_6 = arith.constant 0 : index
    %c0_7 = arith.constant 0 : index
    %10 = vector.load %arg3[%c0_4, %c0_5, %c0_6, %c0_7] : memref<1x4x2x128xf32, #tpu.memory_space<vmem>>, vector<1x4x2x128xf32>
    %11 = vector.shape_cast %10 : vector<1x4x2x128xf32> to vector<4x2x128xf32>
    %12 = vector.shape_cast %9 : vector<4x2x128xf32> to vector<1x4x2x128xf32>
    tpu.vector_store %arg3[%c0_4, %c0_5, %c0_6, %c0_7], %12 {strides = array<i32>} : memref<1x4x2x128xf32, #tpu.memory_space<vmem>>, vector<1x4x2x128xf32>,
    return
  }
  func.func @transform_0(%arg0: i32, %arg1: i32) -> (i32, i32, i32, i32) {
    %c0_i32 = arith.constant 0 : i32
    %c0_i32_0 = arith.constant 0 : i32
    %c0_i32_1 = arith.constant 0 : i32
    return %arg0, %c0_i32, %arg1, %c0_i32_0 : i32, i32, i32, i32
  }
  func.func @transform_1(%arg0: i32, %arg1: i32) -> (i32, i32, i32, i32) {
    %c0_i32 = arith.constant 0 : i32
    %c0_i32_0 = arith.constant 0 : i32
    %c0_i32_1 = arith.constant 0 : i32
    return %arg0, %c0_i32, %arg1, %c0_i32_0 : i32, i32, i32, i32
  }
}

</mosaic_0001>

<bundles_post_ra>
// kernel: tpu_custom_call.1
= control target key start
LH: loop header
LB: loop body
LE: loop exit
PB: predicated region body
PF: predicated region fallthrough
CT: control target
= control target key end

     0   :  { %6 = vsyncpa [#allocation3], 0  ;;  %s668_s0 = inlined_call_operand.hbm [shape: f32[2,4,2,128], index: 0, kind: input, shape index: {}]   ;;  %s669_s1 = inlined_call_operand.hbm [shape: f32[2,4,2,128], index: 1, kind: output, shape index: {}]  }
   0x1   :  { %8 = vsyncpa [#allocation3 + $0x1], 0 }
   0x2   :  { %9 = vsyncpa [#allocation4], 0 }
   0x3   :  { %11 = vsyncpa [#allocation4 + $0x1], 0  ;;  %s493_s6 = smov 0   ;;  %s495_s7 = smov 0  }
   0x4   :  { %s497_s8 = smov 0   ;;  %s499_s9 = smov 0  }
   0x5   :  { %s501_s10 = smov 0   ;;  %s503_s11 = smov 0  }
   0x6 LB: > { %s278_s12 = sadd.s32 4294967295, %s475_s11   ;;  %s279_s13 = sadd.s32 4294967294, %s475_s11   ;;  %s475_s11 = sphi %s503_s11, %s17_s11   ;;  %s471_s10 = sphi %s501_s10, %s684_s10   ;;  %s467_s9 = sphi %s499_s9, %s683_s9   ;;  %s463_s8 = sphi %s497_s8, %s682_s8   ;;  %s459_s7 = sphi %s495_s7, %s681_s7   ;;  %s455_s6 = sphi %s493_s6, %s680_s6  }
   0x7   : > { %s29_s14 = sadd.s32 1, %s471_s10  ;;  %s38_s15 = sadd.s32 1, %s463_s8 }
   0x8   : > { %p31_p0 = scmp.ge.s32.totalorder %s29_s14, 2  ;;  %p45_p1 = scmp.ne.s32.totalorder %s463_s8, %s459_s7 }
   0x9   : > { %p46_p2 = scmp.eq.s32.totalorder %s475_s11, 0  ;;  %p51_p3 = scmp.ne.s32.totalorder %s459_s7, %s455_s6 }
   0xa   : > { %s686_s14 = smov (%p31_p0, %s29_s14), 0  ;;  %p52_p5 = scmp.eq.s32.totalorder %s278_s12, 0 }
   0xb   : > { %p534_p4 = por %p46_p2, %p45_p1  ;;  %s33_s17 = ssub.s32 %s471_s10, %s686_s14 }
   0xc   : > { %p77_p6 = scmp.eq.s32.totalorder %s278_s12, 1  ;;  %p36_p7 = scmp.eq.s32.totalorder %s33_s17, 0 }
   0xd   : > { %p540_p8 = por %p52_p5, %p51_p3  ;;  %p83_p10 = scmp.eq.s32.totalorder %s279_s13, 1 }
   0xe   : > { %p544_p9 = por %p77_p6, %p45_p1  ;;  %p307_p13 = scmp.lt.s32.totalorder %s475_s11, 2 }
   0xf   : > { %s549_s20 = scalar_select %p36_p7, %s463_s8, %s38_s15  }
  0x10   : > { %s673_s19 = scalar_select %p544_p9, 1, 0 }
  0x11   : > { %p551_p11 = por %p83_p10, %p51_p3  ;;  %s103_s22 = sand.u32 1, %s463_s8  }
  0x12   : > { %s282_s23 = sshll.u32 %s103_s22, 3  ;;  %s293_s24 = sshll.u32 %s471_s10, 7 }
  0x13   : > { %s674_s21 = scalar_select %p551_p11, 1, 0 }
  0x14   : > { %s562_s27 = scalar_lea.hbm %s668_s0, %s293_s24  ;;  %s107_s28 = scalar_lea.vmem [#allocation2], %s282_s23 }
  0x15   : > { %s115_s29 = sshll.u32 %s107_s28, 4  ;;  %p568_p0 = pnand %p307_p13, %p534_p4  ;;  %s564_s29 = int_to_ptr.vmem [resolvable:$true] %s115_s29 }
  0x16   : > { %s573_s2 = scalar_lea.sflag [#allocation3], %s103_s22  ;;  %s363_s3 = scalar_lea.hbm %s562_s27, 128 }
  0x17   : > { %p364_p2 = scmp.ne.s32.totalorder %s562_s27, %s363_s3  ;;  %p365_p3 = pneg %p568_p0 }
  0x18   : > { %s368_s12 = scalar_lea.hbm %s668_s0, 256  ;;  %p369_p4 = scmp.lt.u32.totalorder %s562_s27, %s668_s0 }
  0x19   : > { %p366_p5 = pnand %p365_p3, %p364_p2  ;;  %p370_p7 = scmp.lt.u32.totalorder %s368_s12, %s363_s3 }
  0x1a   : > { %p372_p13 = scmp.lt.u32.totalorder %s363_s3, %s562_s27 }
  0x1b   : > { %p367_p6 = pneg %p366_p5  ;;  %p371_p10 = por %p370_p7, %p369_p4 }
  0x1d   : > { %p373_p12 = por %p372_p13, %p371_p10 }
  0x1f   : > { %p374_p1 = pnand %p373_p12, %p367_p6 }
  0x21   : > { %377 = shalt.err (!%p374_p1)
}
  0x22   : > { %s378_s16 = scalar_lea.vmem %s564_s29, 128  ;;  %s477_s17 = smov [#allocation2]  }
  0x23   : > { %p379_p2 = scmp.ne.s32.totalorder %s564_s29, %s378_s16  ;;  %s383_s22 = sshll.u32 %s477_s17, 4  ;;  %s384_s22 = int_to_ptr.vmem [resolvable:$false] %s383_s22 }
  0x24   : > { %s385_s23 = scalar_lea.vmem %s384_s22, 256  ;;  %p386_p9 = scmp.lt.s32.totalorder %s564_s29, %s384_s22 }
  0x25   : > { %p381_p5 = pnand %p379_p2, %p365_p3  ;;  %p387_p4 = scmp.lt.s32.totalorder %s385_s23, %s378_s16 }
  0x27   : > { %p382_p11 = pneg %p381_p5  ;;  %p388_p7 = por %p387_p4, %p386_p9 }
  0x29   : > { %p389_p10 = pnand %p388_p7, %p382_p11 }
  0x2b   : > { %392 = shalt.err (!%p389_p10)
}
  0x2c   : > { %s478_s24 = smov 32   ;;  %s479_s25 = smov 2  }
  0x2d   : > { %302 = dma.hbm_to_vmem [thread:$0]  (!%p568_p0), %s562_s27, 128, %s564_s29, %s573_s2, %s478_s24, %s478_s24, %s479_s25  }
  0x2e   : > { %p123_p12 = scmp.lt.s32.totalorder %s475_s11, 3  ;;  %p676_p1 = scmp.ge.s32.totalorder %s475_s11, 1 }
  0x30   : > { %p124_p3 = pnand %p676_p1, %p123_p12 }
  0x31   : > { %s605_s26 = sand.u32 (!%p124_p3), 1, %s459_s7  }
  0x32   : > { %127 = sbr.rel (%p124_p3) target bundleno = 99 (0x63), region = 24  ;;  %s286_s28 = sshll.u32 (!%p124_p3), %s605_s26, 3 }
  0x33   : > { %s130_s3 = scalar_lea.sflag (!%p124_p3), [#allocation3], %s605_s26  ;;  %s133_s4 = scalar_lea.vmem (!%p124_p3), [#allocation2], %s286_s28 }
  0x39   : > { %446 = dma.done.wait (%p540_p8), %s130_s3, 128  }
  0x3a   : > { %448 = vsyncadd (%p540_p8), %s130_s3, 4294967168  ;;  %vm160_vm0 = vcmask 1041408   ;;  %v152_v0 = vld [vmem:[%s133_s4] sm:$0x3]  ;;  %v153_v1 = vld [vmem:[%s133_s4 + $0x2] sm:$0x3] }
  0x3b   : > { %v154_v2 = vld [vmem:[%s133_s4 + $0x4] sm:$0x3]  ;;  %v155_v3 = vld [vmem:[%s133_s4 + $0x6] sm:$0x3]  ;;  %v156_v4 = vmul.f32 %v152_v0, %v152_v0  ;;  %v157_v5 = vmul.f32 %v153_v1, %v153_v1  ;;  %s151_s18 = scalar_lea.vmem [#allocation5], %s286_s28  ;;  %s294_s29 = sshll.u32 %s467_s9, 7 }
  0x3c   : > { %v158_v6 = vmul.f32 %v154_v2, %v154_v2  ;;  %v159_v7 = vmul.f32 %v155_v3, %v155_v3  ;;  %s193_s27 = sshll.u32 %s151_s18, 4  ;;  %s619_s5 = scalar_lea.hbm %s669_s1, %s294_s29  ;;  %s614_s27 = int_to_ptr.vmem [resolvable:$true] %s193_s27 }
  0x3d   : > { %v161_v8 = vsel %vm160_vm0, %v156_v4, 0.0  ;;  %v162_v9 = vsel %vm160_vm0, %v157_v5, 0.0  ;;  %s179_s9 = scalar_lea.sflag [#allocation4], %s605_s26  ;;  %s393_s12 = scalar_lea.vmem %s614_s27, 128 }
  0x3e   : > { %v164_v10 = vsel %vm160_vm0, %v158_v6, 0.0  ;;  %v163_v11 = vadd.f32 %v162_v9, %v161_v8  ;;  %v166_v12 = vsel %vm160_vm0, %v159_v7, 0.0  ;;  %p394_p8 = scmp.ne.s32.totalorder %s614_s27, %s393_s12  ;;  %p677_p9 = scmp.ne.s32.totalorder %s673_s19, 0 }
  0x3f   : > { %s480_s13 = smov [#allocation5]  }
  0x40   : > { %v165_v13 = vadd.f32 %v164_v10, %v163_v11  ;;  %p395_p11 = pnand %p394_p8, %p677_p9  ;;  %s397_s15 = sshll.u32 %s480_s13, 4  ;;  %s398_s15 = int_to_ptr.vmem [resolvable:$false] %s397_s15 }
  0x41   : > { %s399_s16 = scalar_lea.vmem %s398_s15, 256  ;;  %p400_p6 = scmp.lt.s32.totalorder %s614_s27, %s398_s15 }
  0x42   : > { %v167_v14 = vadd.f32 %v166_v12, %v165_v13  ;;  %p396_p0 = pneg %p395_p11  ;;  %p401_p13 = scmp.lt.s32.totalorder %s399_s16, %s393_s12 }
  0x44   : > { %v168_v15 = vmax.f32 %v167_v14, 1e-24  ;;  %p402_p2 = por %p401_p13, %p400_p6 }
  0x46   : > { %361 = vrsqrt.f32 %v168_v15  ;;  %p403_p5 = pnand %p402_p2, %p396_p0 }
  0x50   : > { %v362_v16 = vpop.eup %361 }
  0x51   : > { %v170_v17 = vmul.f32 %v362_v16, %v152_v0  ;;  %v171_v18 = vmul.f32 %v362_v16, %v153_v1  ;;  %v172_v19 = vmul.f32 %v362_v16, %v154_v2  ;;  %v173_v20 = vmul.f32 %v362_v16, %v155_v3 }
  0x53   : > { %174 = vst [vmem:[%s151_s18] sm:$0x3] %v170_v17  ;;  %175 = vst [vmem:[%s151_s18 + $0x2] sm:$0x3] %v171_v18 }
  0x54   : > { %176 = vst [vmem:[%s151_s18 + $0x4] sm:$0x3] %v172_v19  ;;  %177 = vst [vmem:[%s151_s18 + $0x6] sm:$0x3] %v173_v20 }
  0x55   : > { %406 = shalt.err (!%p403_p5)
}
  0x56   : > { %s407_s17 = scalar_lea.hbm %s619_s5, 128  ;;  %s411_s24 = scalar_lea.hbm %s669_s1, 256 }
  0x57   : > { %p408_p4 = scmp.ne.s32.totalorder %s619_s5, %s407_s17  ;;  %p412_p12 = scmp.lt.u32.totalorder %s619_s5, %s669_s1 }
  0x58   : > { %p413_p1 = scmp.lt.u32.totalorder %s411_s24, %s407_s17  ;;  %p415_p8 = scmp.lt.u32.totalorder %s407_s17, %s619_s5 }
  0x59   : > { %p409_p7 = pnand %p408_p4, %p677_p9 }
  0x5a   : > { %p414_p3 = por %p413_p1, %p412_p12 }
  0x5b   : > { %p410_p10 = pneg %p409_p7 }
  0x5c   : > { %p416_p11 = por %p415_p8, %p414_p3 }
  0x5e   : > { %p417_p0 = pnand %p416_p11, %p410_p10 }
  0x60   : > { %420 = shalt.err (!%p417_p0)
}
  0x61   : > { %s481_s3 = smov 32   ;;  %s482_s4 = smov 2  }
  0x62   : > { %297 = dma.vmem_to_hbm [thread:$0]  (%p677_p9), %s614_s27, 128, %s619_s5, %s179_s9, %s481_s3, %s481_s3, %s482_s4  }
  0x63 PF: > { %s208_s18 = sand.u32 1, %s455_s6   ;;  %p678_p6 = scmp.ne.s32.totalorder %s674_s21, 0 }
  0x64   : > { %p679_p13 = scmp.ge.s32.totalorder %s475_s11, 2  ;;  %s209_s29 = scalar_lea.sflag [#allocation4], %s208_s18 }
  0x66   : > { %p304_p2 = pnand %p679_p13, %p678_p6 }
  0x68   : > { %450 = dma.done.wait (!%p304_p2), %s209_s29, 128  }
  0x69   : > { %452 = vsyncadd (!%p304_p2), %s209_s29, 4294967168  ;;  %s17_s11 = sadd.s32 1, %s475_s11   ;;  %s680_s6 = smov %s459_s7 }
  0x6a   : > { %p14_p5 = scmp.ge.s32.totalorder %s17_s11, 4   ;;  %s681_s7 = smov %s463_s8 }
  0x6b   : > { %s682_s8 = smov %s549_s20  ;;  %s683_s9 = smov %s471_s10 }
  0x6c   : > { %s684_s10 = smov %s686_s14  ;;  %16 = sbr.rel (!%p14_p5) target bundleno = 6 (0x6), region = 69 }
  0x73   :  { %214 = vsyncpa [#allocation3], 1 }
  0x74   :  { %216 = vsyncpa [#allocation3 + $0x1], 1 }
  0x75   :  { %217 = vsyncpa [#allocation4], 1 }
  0x76   :  { %219 = vsyncpa [#allocation4 + $0x1], 1 }

</bundles_post_ra>
